<compile_context>
chip_gen: v6e
topology: v6e:2x2x1
jax: 0.10.0
libtpu: 0.0.40
codegen_flags: <defaults>
</compile_context>

<pallas_src>
import jax
import jax.numpy as jnp
from jax.experimental import pallas as pl
from jax.experimental.pallas import tpu as pltpu  # noqa: F401  (TPU backend assumed)

# ---------------------------------------------------------------------------
# Model hyper-parameters (small, consistent with the module's constructor).
# ---------------------------------------------------------------------------
EMBED_DIM = 32
NUM_HEADS = 4
NUM_KV_HEADS = 2
Q_LORA_RANK = 16
KV_LORA_RANK = 16
QK_NOPE_HEAD_DIM = 8
QK_ROPE_HEAD_DIM = 8
QK_HEAD_DIM = QK_NOPE_HEAD_DIM + QK_ROPE_HEAD_DIM      # 16
V_HEAD_DIM = 8
CONTEXT_LENGTH = 16
BATCH = 2
SEQ = 8
RMS_EPS = 1.1920929e-07     # torch.finfo(float32).eps (F.rms_norm default eps=None)


# ---------------------------------------------------------------------------
# Fused Pallas kernel: Q/KV low-rank projections + RMSNorm + RoPE + causal
# grouped attention + output projection, all in one invocation.
# ---------------------------------------------------------------------------
def _mla_kernel(x_ref, mask_ref,
                wqa_ref, wqb_ref, wqb_sw_ref,
                wkvl_ref, wkr_ref, wkr_sw_ref, wkvb_ref, wo_ref,
                cos_q_ref, sin_q_ref, cos_k_ref, sin_k_ref,
                out_ref, ctx_ref):
    x = x_ref[...]                                       # (B*S, E)

    def matmul_nt(a, w):
        # a: (M, K), w: (N, K) torch nn.Linear layout -> (M, N); MXU-native,
        # no transpose op anywhere.
        return jax.lax.dot_general(a, w, (((1,), (1,)), ((), ())),
                                   preferred_element_type=jnp.float32)

    def rmsnorm(t):
        ms = jnp.mean(t * t, axis=-1, keepdims=True)
        return t * jax.lax.rsqrt(ms + RMS_EPS)

    # ---- Q path: Q_a -> rms_norm -> Q_b -> RoPE on rope sub-dims ----------
    q_lat = rmsnorm(matmul_nt(x, wqa_ref[...]))          # (B*S, q_lora)
    q_full = matmul_nt(q_lat, wqb_ref[...])              # (B*S, H*Dq)
    q_sw = matmul_nt(q_lat, wqb_sw_ref[...])             # pair-swapped rope cols
    # RoPE as pure elementwise math (cos_q is 1 on nope cols, sin_q is 0 there).
    q_roped = q_full * cos_q_ref[...] + q_sw * sin_q_ref[...]

    # ---- KV path: KV_a -> (latent, k_rope); rms_norm(latent) -> KV_b ------
    kv_lat = rmsnorm(matmul_nt(x, wkvl_ref[...]))        # (B*S, kv_lora)
    k_rope = matmul_nt(x, wkr_ref[...])                  # (B*S, rope_dim)
    k_rope_sw = matmul_nt(x, wkr_sw_ref[...])            # pair-swapped rows
    k_roped = k_rope * cos_k_ref[...] + k_rope_sw * sin_k_ref[...]
    kv = matmul_nt(kv_lat, wkvb_ref[...])                # (B*S, KVH*(nope+v))

    # ---- Causal grouped attention over the flattened (B*S) axis -----------
    scale = 1.0 / jnp.sqrt(jnp.float32(QK_HEAD_DIM))
    mask = mask_ref[...] != 0.0                          # block-diag causal mask
    group = NUM_HEADS // NUM_KV_HEADS
    kv_stride = QK_NOPE_HEAD_DIM + V_HEAD_DIM

    ctx_heads = []
    for h in range(NUM_HEADS):                           # 4 tiny heads, unrolled
        g = h // group
        q_h = q_roped[:, h * QK_HEAD_DIM:(h + 1) * QK_HEAD_DIM]          # (BS, Dq)
        k_nope = kv[:, g * kv_stride: g * kv_stride + QK_NOPE_HEAD_DIM]  # (BS, nope)
        v_g = kv[:, g * kv_stride + QK_NOPE_HEAD_DIM:(g + 1) * kv_stride]
        k_g = jnp.concatenate([k_nope, k_roped], axis=-1)                # (BS, Dq)

        s = jax.lax.dot_general(q_h, k_g, (((1,), (1,)), ((), ())),
                                preferred_element_type=jnp.float32) * scale
        s = jnp.where(mask, s, -jnp.inf)
        m = jnp.max(s, axis=-1, keepdims=True)
        p = jnp.exp(s - m)
        l = jnp.sum(p, axis=-1, keepdims=True)
        # EUP reciprocal + multiply instead of divide (approx=True is a free
        # further win when bit-exact validation is not required).
        p = p * pl.reciprocal(l, approx=False)
        ctx_heads.append(jnp.dot(p, v_g, preferred_element_type=jnp.float32))

    ctx = jnp.concatenate(ctx_heads, axis=-1)            # (B*S, H*v_head_dim)
    ctx_ref[...] = ctx
    out_ref[...] = matmul_nt(ctx, wo_ref[...])           # output projection


@jax.jit
def mla_forward(x, mask, wqa, wqb, wqb_sw, wkvl, wkr, wkr_sw, wkvb, wo,
                cos_q, sin_q, cos_k, sin_k):
    B, S, E = x.shape
    x2d = x.reshape(B * S, E)                            # free reshape, no transpose
    out2d, ctx2d = pl.pallas_call(
        _mla_kernel,
        out_shape=(jax.ShapeDtypeStruct((B * S, E), jnp.float32),
                   jax.ShapeDtypeStruct((B * S, NUM_HEADS * V_HEAD_DIM), jnp.float32)),
    )(x2d, mask, wqa, wqb, wqb_sw, wkvl, wkr, wkr_sw, wkvb, wo,
      cos_q, sin_q, cos_k, sin_k)
    return out2d.reshape(B, S, E), ctx2d.reshape(B, S, NUM_HEADS * V_HEAD_DIM)


# ---------------------------------------------------------------------------
# Pure-JAX reference mirroring the PyTorch MultiHeadLatentAttention.forward.
# ---------------------------------------------------------------------------
def reference_forward(x, wqa, wqb, wkva, wkvb, wo, cos, sin):
    B, S, E = x.shape
    H, KVH = NUM_HEADS, NUM_KV_HEADS
    nope, rope_d, v_d, dq = QK_NOPE_HEAD_DIM, QK_ROPE_HEAD_DIM, V_HEAD_DIM, QK_HEAD_DIM

    def rms(t):
        return t * jax.lax.rsqrt(jnp.mean(t * t, axis=-1, keepdims=True) + RMS_EPS)

    def apply_rope(t):                                    # t: (B,S,nh,rope_d)
        tr = t.reshape(*t.shape[:-1], rope_d // 2, 2)
        re, im = tr[..., 0], tr[..., 1]
        c = cos[None, :, None, :]
        s = sin[None, :, None, :]
        out_r = re * c - im * s
        out_i = im * c + re * s
        return jnp.stack([out_r, out_i], axis=-1).reshape(t.shape)

    q = rms(x @ wqa.T) @ wqb.T
    q = q.reshape(B, S, H, dq)
    q_nope, q_rope = q[..., :nope], q[..., nope:]
    q = jnp.concatenate([q_nope, apply_rope(q_rope)], axis=-1).transpose(0, 2, 1, 3)

    kv_a = x @ wkva.T
    kv_latent, k_rope = kv_a[..., :KV_LORA_RANK], kv_a[..., KV_LORA_RANK:]
    k_rope = jnp.broadcast_to(k_rope[:, :, None, :], (B, S, KVH, rope_d))
    k_rope = apply_rope(k_rope).transpose(0, 2, 1, 3)                   # (B,KVH,S,rope)

    kv = (rms(kv_latent) @ wkvb.T).reshape(B, S, KVH, nope + v_d).transpose(0, 2, 1, 3)
    k_nope, v = kv[..., :nope], kv[..., nope:]
    k = jnp.concatenate([k_nope, k_rope], axis=-1)                      # (B,KVH,S,dq)

    rep = H // KVH
    k = jnp.repeat(k, rep, axis=1)
    v = jnp.repeat(v, rep, axis=1)

    scores = jnp.einsum("bhqd,bhkd->bhqk", q, k) / jnp.sqrt(jnp.float32(dq))
    causal = jnp.tril(jnp.ones((S, S), dtype=bool))
    scores = jnp.where(causal, scores, -jnp.inf)
    attn = jax.nn.softmax(scores, axis=-1)
    ctx = jnp.einsum("bhqk,bhkd->bhqd", attn, v).transpose(0, 2, 1, 3).reshape(B, S, H * v_d)
    return ctx @ wo.T, ctx


# ---------------------------------------------------------------------------
# Main
# ---------------------------------------------------------------------------
if __name__ == "__main__":
    key = jax.random.PRNGKey(0)
    ks = jax.random.split(key, 6)

    x = jax.random.normal(ks[0], (BATCH, SEQ, EMBED_DIM), dtype=jnp.float32)

    def uinit(k, shape, fan_in):
        b = 1.0 / jnp.sqrt(jnp.float32(fan_in))
        return jax.random.uniform(k, shape, jnp.float32, -b, b)

    # torch nn.Linear weight layout: (out_features, in_features).
    wqa = uinit(ks[1], (Q_LORA_RANK, EMBED_DIM), EMBED_DIM)
    wqb = uinit(ks[2], (NUM_HEADS * QK_HEAD_DIM, Q_LORA_RANK), Q_LORA_RANK)
    wkva = uinit(ks[3], (KV_LORA_RANK + QK_ROPE_HEAD_DIM, EMBED_DIM), EMBED_DIM)
    wkvb = uinit(ks[4], (NUM_KV_HEADS * (QK_NOPE_HEAD_DIM + V_HEAD_DIM), KV_LORA_RANK),
                 KV_LORA_RANK)
    # NOTE: the module's __init__ zero-inits output_proj; we use a random wo
    # here so the final projection matmul is actually validated numerically.
    wo = uinit(ks[5], (EMBED_DIM, NUM_HEADS * V_HEAD_DIM), NUM_HEADS * V_HEAD_DIM)

    # One-time host-side weight prep (outside jit): split KV_a, build the
    # pair-swapped rope-weight copies that realize view_as_complex RoPE as
    # pure elementwise math inside the kernel.
    wkv_lat = wkva[:KV_LORA_RANK]                        # (kv_lora, E)
    wk_rope = wkva[KV_LORA_RANK:]                        # (rope_dim, E)

    def pair_swap_rows(w):                               # swap rows 2i <-> 2i+1
        return w.reshape(-1, 2, w.shape[-1])[:, ::-1, :].reshape(w.shape)

    wk_rope_sw = pair_swap_rows(wk_rope)

    blocks = []
    for h in range(NUM_HEADS):
        base = h * QK_HEAD_DIM
        blocks.append(jnp.zeros((QK_NOPE_HEAD_DIM, Q_LORA_RANK), jnp.float32))
        blocks.append(pair_swap_rows(wqb[base + QK_NOPE_HEAD_DIM: base + QK_HEAD_DIM]))
    wqb_sw = jnp.concatenate(blocks, axis=0)             # (H*Dq, q_lora)

    # RoPE tables (freqs_cis = cos + i*sin, shape (context_length, rope_dim/2)).
    inv_freq = 1.0 / (10000.0 ** (jnp.arange(0, QK_ROPE_HEAD_DIM, 2, dtype=jnp.float32)
                                  / QK_ROPE_HEAD_DIM))
    angles = jnp.outer(jnp.arange(CONTEXT_LENGTH, dtype=jnp.float32), inv_freq)
    cos = jnp.cos(angles)[:SEQ]                          # (S, rope_dim/2)
    sin = jnp.sin(angles)[:SEQ]

    # Kernel-side interleave-expanded tables.
    cos_r = jnp.repeat(cos, 2, axis=-1)                                        # (S, rope)
    sign = jnp.where(jnp.arange(QK_ROPE_HEAD_DIM) % 2 == 0, -1.0, 1.0).astype(jnp.float32)
    sin_r = jnp.repeat(sin, 2, axis=-1) * sign                                 # (S, rope)

    cos_k = jnp.tile(cos_r, (BATCH, 1))                                        # (B*S, rope)
    sin_k = jnp.tile(sin_r, (BATCH, 1))

    cos_q_head = jnp.concatenate([jnp.ones((SEQ, QK_NOPE_HEAD_DIM), jnp.float32), cos_r], -1)
    sin_q_head = jnp.concatenate([jnp.zeros((SEQ, QK_NOPE_HEAD_DIM), jnp.float32), sin_r], -1)
    cos_q = jnp.tile(cos_q_head, (BATCH, NUM_HEADS))                           # (B*S, H*Dq)
    sin_q = jnp.tile(sin_q_head, (BATCH, NUM_HEADS))

    # Block-diagonal (per-batch) causal mask over the flattened (B*S) axis.
    r = jnp.arange(BATCH * SEQ)
    mask = (((r[:, None] // SEQ) == (r[None, :] // SEQ)) &
            ((r[:, None] % SEQ) >= (r[None, :] % SEQ))).astype(jnp.float32)

    out, ctx = mla_forward(x, mask, wqa, wqb, wqb_sw, wkv_lat, wk_rope, wk_rope_sw,
                           wkvb, wo, cos_q, sin_q, cos_k, sin_k)
    out = jax.block_until_ready(out)
    ctx = jax.block_until_ready(ctx)

    ref_out, ref_ctx = reference_forward(x, wqa, wqb, wkva, wkvb, wo, cos, sin)

    assert jnp.allclose(ctx, ref_ctx, atol=1e-4, rtol=1e-4), "attention context mismatch"
    assert jnp.allclose(out, ref_out, atol=1e-4, rtol=1e-4), "output mismatch"

    print("KERNEL_OK")
</pallas_src>

<mosaic_0001>
module attributes {stable_mosaic.version = 11 : i64} {
  func.func @_mla_kernel(%arg0: memref<16x32xf32, #tpu.memory_space<vmem>>, %arg1: memref<16x16xf32, #tpu.memory_space<vmem>>, %arg2: memref<16x32xf32, #tpu.memory_space<vmem>>, %arg3: memref<64x16xf32, #tpu.memory_space<vmem>>, %arg4: memref<64x16xf32, #tpu.memory_space<vmem>>, %arg5: memref<16x32xf32, #tpu.memory_space<vmem>>, %arg6: memref<8x32xf32, #tpu.memory_space<vmem>>, %arg7: memref<8x32xf32, #tpu.memory_space<vmem>>, %arg8: memref<32x16xf32, #tpu.memory_space<vmem>>, %arg9: memref<32x32xf32, #tpu.memory_space<vmem>>, %arg10: memref<16x64xf32, #tpu.memory_space<vmem>>, %arg11: memref<16x64xf32, #tpu.memory_space<vmem>>, %arg12: memref<16x8xf32, #tpu.memory_space<vmem>>, %arg13: memref<16x8xf32, #tpu.memory_space<vmem>>, %arg14: memref<16x32xf32, #tpu.memory_space<vmem>>, %arg15: memref<16x32xf32, #tpu.memory_space<vmem>>) attributes {dimension_semantics = [], scalar_prefetch = 0 : i64, scratch_operands = 0 : i64, tpu.core_type = #tpu.core_type<tc>} {
    %c0 = arith.constant 0 : index
    %c0_0 = arith.constant 0 : index
    %0 = vector.load %arg0[%c0, %c0_0] : memref<16x32xf32, #tpu.memory_space<vmem>>, vector<16x32xf32>
    %c0_1 = arith.constant 0 : index
    %c0_2 = arith.constant 0 : index
    %1 = vector.load %arg2[%c0_1, %c0_2] : memref<16x32xf32, #tpu.memory_space<vmem>>, vector<16x32xf32>
    %cst = arith.constant dense<0.000000e+00> : vector<16x16xf32>
    %2 = tpu.matmul %0, %1, %cst {dimension_numbers = #tpu.dot_dimension_numbers<[1], [1], [0], [0], [0, 0, 1, 0], [], []>} : vector<16x32xf32>, vector<16x32xf32>, vector<16x16xf32> -> vector<16x16xf32>
    %3 = arith.mulf %2, %2 : vector<16x16xf32>
    %cst_3 = arith.constant dense<0.000000e+00> : vector<16xf32>
    %4 = vector.multi_reduction <add>, %3, %cst_3 [1] : vector<16x16xf32> to vector<16xf32>
    %5 = vector.shape_cast %4 : vector<16xf32> to vector<16x1xf32>
    %cst_4 = arith.constant 1.600000e+01 : f32
    %6 = vector.broadcast %cst_4 : f32 to vector<16x1xf32>
    %7 = arith.divf %5, %6 : vector<16x1xf32>
    %cst_5 = arith.constant 1.1920929E-7 : f32
    %8 = vector.broadcast %cst_5 : f32 to vector<16x1xf32>
    %9 = arith.addf %7, %8 : vector<16x1xf32>
    %10 = math.rsqrt %9 : vector<16x1xf32>
    %11 = vector.broadcast %10 : vector<16x1xf32> to vector<16x16xf32>
    %12 = arith.mulf %2, %11 : vector<16x16xf32>
    %c0_6 = arith.constant 0 : index
    %c0_7 = arith.constant 0 : index
    %13 = vector.load %arg3[%c0_6, %c0_7] : memref<64x16xf32, #tpu.memory_space<vmem>>, vector<64x16xf32>
    %cst_8 = arith.constant dense<0.000000e+00> : vector<16x64xf32>
    %14 = tpu.matmul %12, %13, %cst_8 {dimension_numbers = #tpu.dot_dimension_numbers<[1], [1], [0], [0], [0, 0, 1, 0], [], []>} : vector<16x16xf32>, vector<64x16xf32>, vector<16x64xf32> -> vector<16x64xf32>
    %c0_9 = arith.constant 0 : index
    %c0_10 = arith.constant 0 : index
    %15 = vector.load %arg4[%c0_9, %c0_10] : memref<64x16xf32, #tpu.memory_space<vmem>>, vector<64x16xf32>
    %cst_11 = arith.constant dense<0.000000e+00> : vector<16x64xf32>
    %16 = tpu.matmul %12, %15, %cst_11 {dimension_numbers = #tpu.dot_dimension_numbers<[1], [1], [0], [0], [0, 0, 1, 0], [], []>} : vector<16x16xf32>, vector<64x16xf32>, vector<16x64xf32> -> vector<16x64xf32>
    %c0_12 = arith.constant 0 : index
    %c0_13 = arith.constant 0 : index
    %17 = vector.load %arg10[%c0_12, %c0_13] : memref<16x64xf32, #tpu.memory_space<vmem>>, vector<16x64xf32>
    %18 = arith.mulf %14, %17 : vector<16x64xf32>
    %c0_14 = arith.constant 0 : index
    %c0_15 = arith.constant 0 : index
    %19 = vector.load %arg11[%c0_14, %c0_15] : memref<16x64xf32, #tpu.memory_space<vmem>>, vector<16x64xf32>
    %20 = arith.mulf %16, %19 : vector<16x64xf32>
    %21 = arith.addf %18, %20 : vector<16x64xf32>
    %c0_16 = arith.constant 0 : index
    %c0_17 = arith.constant 0 : index
    %22 = vector.load %arg5[%c0_16, %c0_17] : memref<16x32xf32, #tpu.memory_space<vmem>>, vector<16x32xf32>
    %cst_18 = arith.constant dense<0.000000e+00> : vector<16x16xf32>
    %23 = tpu.matmul %0, %22, %cst_18 {dimension_numbers = #tpu.dot_dimension_numbers<[1], [1], [0], [0], [0, 0, 1, 0], [], []>} : vector<16x32xf32>, vector<16x32xf32>, vector<16x16xf32> -> vector<16x16xf32>
    %24 = arith.mulf %23, %23 : vector<16x16xf32>
    %cst_19 = arith.constant dense<0.000000e+00> : vector<16xf32>
    %25 = vector.multi_reduction <add>, %24, %cst_19 [1] : vector<16x16xf32> to vector<16xf32>
    %26 = vector.shape_cast %25 : vector<16xf32> to vector<16x1xf32>
    %cst_20 = arith.constant 1.600000e+01 : f32
    %27 = vector.broadcast %cst_20 : f32 to vector<16x1xf32>
    %28 = arith.divf %26, %27 : vector<16x1xf32>
    %cst_21 = arith.constant 1.1920929E-7 : f32
    %29 = vector.broadcast %cst_21 : f32 to vector<16x1xf32>
    %30 = arith.addf %28, %29 : vector<16x1xf32>
    %31 = math.rsqrt %30 : vector<16x1xf32>
    %32 = vector.broadcast %31 : vector<16x1xf32> to vector<16x16xf32>
    %33 = arith.mulf %23, %32 : vector<16x16xf32>
    %c0_22 = arith.constant 0 : index
    %c0_23 = arith.constant 0 : index
    %34 = vector.load %arg6[%c0_22, %c0_23] : memref<8x32xf32, #tpu.memory_space<vmem>>, vector<8x32xf32>
    %cst_24 = arith.constant dense<0.000000e+00> : vector<16x8xf32>
    %35 = tpu.matmul %0, %34, %cst_24 {dimension_numbers = #tpu.dot_dimension_numbers<[1], [1], [0], [0], [0, 0, 1, 0], [], []>} : vector<16x32xf32>, vector<8x32xf32>, vector<16x8xf32> -> vector<16x8xf32>
    %c0_25 = arith.constant 0 : index
    %c0_26 = arith.constant 0 : index
    %36 = vector.load %arg7[%c0_25, %c0_26] : memref<8x32xf32, #tpu.memory_space<vmem>>, vector<8x32xf32>
    %cst_27 = arith.constant dense<0.000000e+00> : vector<16x8xf32>
    %37 = tpu.matmul %0, %36, %cst_27 {dimension_numbers = #tpu.dot_dimension_numbers<[1], [1], [0], [0], [0, 0, 1, 0], [], []>} : vector<16x32xf32>, vector<8x32xf32>, vector<16x8xf32> -> vector<16x8xf32>
    %c0_28 = arith.constant 0 : index
    %c0_29 = arith.constant 0 : index
    %38 = vector.load %arg12[%c0_28, %c0_29] : memref<16x8xf32, #tpu.memory_space<vmem>>, vector<16x8xf32>
    %39 = arith.mulf %35, %38 : vector<16x8xf32>
    %c0_30 = arith.constant 0 : index
    %c0_31 = arith.constant 0 : index
    %40 = vector.load %arg13[%c0_30, %c0_31] : memref<16x8xf32, #tpu.memory_space<vmem>>, vector<16x8xf32>
    %41 = arith.mulf %37, %40 : vector<16x8xf32>
    %42 = arith.addf %39, %41 : vector<16x8xf32>
    %c0_32 = arith.constant 0 : index
    %c0_33 = arith.constant 0 : index
    %43 = vector.load %arg8[%c0_32, %c0_33] : memref<32x16xf32, #tpu.memory_space<vmem>>, vector<32x16xf32>
    %cst_34 = arith.constant dense<0.000000e+00> : vector<16x32xf32>
    %44 = tpu.matmul %33, %43, %cst_34 {dimension_numbers = #tpu.dot_dimension_numbers<[1], [1], [0], [0], [0, 0, 1, 0], [], []>} : vector<16x16xf32>, vector<32x16xf32>, vector<16x32xf32> -> vector<16x32xf32>
    %cst_35 = arith.constant 1.600000e+01 : f32
    %45 = math.sqrt %cst_35 : f32
    %cst_36 = arith.constant 1.000000e+00 : f32
    %46 = arith.divf %cst_36, %45 : f32
    %c0_37 = arith.constant 0 : index
    %c0_38 = arith.constant 0 : index
    %47 = vector.load %arg1[%c0_37, %c0_38] : memref<16x16xf32, #tpu.memory_space<vmem>>, vector<16x16xf32>
    %cst_39 = arith.constant 0.000000e+00 : f32
    %48 = vector.broadcast %cst_39 : f32 to vector<16x16xf32>
    %49 = arith.cmpf one, %47, %48 : vector<16x16xf32>
    %50 = vector.extract_strided_slice %21 {offsets = [0, 0], sizes = [16, 16], strides = [1, 1]} : vector<16x64xf32> to vector<16x16xf32>
    %51 = vector.extract_strided_slice %44 {offsets = [0, 0], sizes = [16, 8], strides = [1, 1]} : vector<16x32xf32> to vector<16x8xf32>
    %52 = vector.extract_strided_slice %44 {offsets = [0, 8], sizes = [16, 8], strides = [1, 1]} : vector<16x32xf32> to vector<16x8xf32>
    %53 = tpu.concatenate %51, %42 in 1 : vector<16x8xf32>, vector<16x8xf32> -> vector<16x16xf32>
    %cst_40 = arith.constant dense<0.000000e+00> : vector<16x16xf32>
    %54 = tpu.matmul %50, %53, %cst_40 {dimension_numbers = #tpu.dot_dimension_numbers<[1], [1], [0], [0], [0, 0, 1, 0], [], []>} : vector<16x16xf32>, vector<16x16xf32>, vector<16x16xf32> -> vector<16x16xf32>
    %55 = vector.broadcast %46 : f32 to vector<16x16xf32>
    %56 = arith.mulf %54, %55 : vector<16x16xf32>
    %cst_41 = arith.constant 0xFF800000 : f32
    %57 = vector.broadcast %cst_41 : f32 to vector<16x16xf32>
    %58 = arith.select %49, %56, %57 : vector<16x16xi1>, vector<16x16xf32>
    %cst_42 = arith.constant dense<0xFF800000> : vector<16xf32>
    %59 = vector.multi_reduction <maximumf>, %58, %cst_42 [1] : vector<16x16xf32> to vector<16xf32>
    %60 = vector.shape_cast %59 : vector<16xf32> to vector<16x1xf32>
    %61 = vector.broadcast %60 : vector<16x1xf32> to vector<16x16xf32>
    %62 = arith.subf %58, %61 : vector<16x16xf32>
    %63 = math.exp %62 : vector<16x16xf32>
    %cst_43 = arith.constant dense<0.000000e+00> : vector<16xf32>
    %64 = vector.multi_reduction <add>, %63, %cst_43 [1] : vector<16x16xf32> to vector<16xf32>
    %65 = vector.shape_cast %64 : vector<16xf32> to vector<16x1xf32>
    %66 = tpu.reciprocal %65 : vector<16x1xf32> -> vector<16x1xf32>
    %67 = vector.broadcast %66 : vector<16x1xf32> to vector<16x16xf32>
    %68 = arith.mulf %63, %67 : vector<16x16xf32>
    %cst_44 = arith.constant dense<0.000000e+00> : vector<16x8xf32>
    %69 = tpu.matmul %68, %52, %cst_44 {dimension_numbers = #tpu.dot_dimension_numbers<[1], [0], [0], [1], [0, 0, 1, 1], [], []>} : vector<16x16xf32>, vector<16x8xf32>, vector<16x8xf32> -> vector<16x8xf32>
    %70 = vector.extract_strided_slice %21 {offsets = [0, 16], sizes = [16, 16], strides = [1, 1]} : vector<16x64xf32> to vector<16x16xf32>
    %71 = vector.extract_strided_slice %44 {offsets = [0, 0], sizes = [16, 8], strides = [1, 1]} : vector<16x32xf32> to vector<16x8xf32>
    %72 = vector.extract_strided_slice %44 {offsets = [0, 8], sizes = [16, 8], strides = [1, 1]} : vector<16x32xf32> to vector<16x8xf32>
    %73 = tpu.concatenate %71, %42 in 1 : vector<16x8xf32>, vector<16x8xf32> -> vector<16x16xf32>
    %cst_45 = arith.constant dense<0.000000e+00> : vector<16x16xf32>
    %74 = tpu.matmul %70, %73, %cst_45 {dimension_numbers = #tpu.dot_dimension_numbers<[1], [1], [0], [0], [0, 0, 1, 0], [], []>} : vector<16x16xf32>, vector<16x16xf32>, vector<16x16xf32> -> vector<16x16xf32>
    %75 = vector.broadcast %46 : f32 to vector<16x16xf32>
    %76 = arith.mulf %74, %75 : vector<16x16xf32>
    %cst_46 = arith.constant 0xFF800000 : f32
    %77 = vector.broadcast %cst_46 : f32 to vector<16x16xf32>
    %78 = arith.select %49, %76, %77 : vector<16x16xi1>, vector<16x16xf32>
    %cst_47 = arith.constant dense<0xFF800000> : vector<16xf32>
    %79 = vector.multi_reduction <maximumf>, %78, %cst_47 [1] : vector<16x16xf32> to vector<16xf32>
    %80 = vector.shape_cast %79 : vector<16xf32> to vector<16x1xf32>
    %81 = vector.broadcast %80 : vector<16x1xf32> to vector<16x16xf32>
    %82 = arith.subf %78, %81 : vector<16x16xf32>
    %83 = math.exp %82 : vector<16x16xf32>
    %cst_48 = arith.constant dense<0.000000e+00> : vector<16xf32>
    %84 = vector.multi_reduction <add>, %83, %cst_48 [1] : vector<16x16xf32> to vector<16xf32>
    %85 = vector.shape_cast %84 : vector<16xf32> to vector<16x1xf32>
    %86 = tpu.reciprocal %85 : vector<16x1xf32> -> vector<16x1xf32>
    %87 = vector.broadcast %86 : vector<16x1xf32> to vector<16x16xf32>
    %88 = arith.mulf %83, %87 : vector<16x16xf32>
    %cst_49 = arith.constant dense<0.000000e+00> : vector<16x8xf32>
    %89 = tpu.matmul %88, %72, %cst_49 {dimension_numbers = #tpu.dot_dimension_numbers<[1], [0], [0], [1], [0, 0, 1, 1], [], []>} : vector<16x16xf32>, vector<16x8xf32>, vector<16x8xf32> -> vector<16x8xf32>
    %90 = vector.extract_strided_slice %21 {offsets = [0, 32], sizes = [16, 16], strides = [1, 1]} : vector<16x64xf32> to vector<16x16xf32>
    %91 = vector.extract_strided_slice %44 {offsets = [0, 16], sizes = [16, 8], strides = [1, 1]} : vector<16x32xf32> to vector<16x8xf32>
    %92 = vector.extract_strided_slice %44 {offsets = [0, 24], sizes = [16, 8], strides = [1, 1]} : vector<16x32xf32> to vector<16x8xf32>
    %93 = tpu.concatenate %91, %42 in 1 : vector<16x8xf32>, vector<16x8xf32> -> vector<16x16xf32>
    %cst_50 = arith.constant dense<0.000000e+00> : vector<16x16xf32>
    %94 = tpu.matmul %90, %93, %cst_50 {dimension_numbers = #tpu.dot_dimension_numbers<[1], [1], [0], [0], [0, 0, 1, 0], [], []>} : vector<16x16xf32>, vector<16x16xf32>, vector<16x16xf32> -> vector<16x16xf32>
    %95 = vector.broadcast %46 : f32 to vector<16x16xf32>
    %96 = arith.mulf %94, %95 : vector<16x16xf32>
    %cst_51 = arith.constant 0xFF800000 : f32
    %97 = vector.broadcast %cst_51 : f32 to vector<16x16xf32>
    %98 = arith.select %49, %96, %97 : vector<16x16xi1>, vector<16x16xf32>
    %cst_52 = arith.constant dense<0xFF800000> : vector<16xf32>
    %99 = vector.multi_reduction <maximumf>, %98, %cst_52 [1] : vector<16x16xf32> to vector<16xf32>
    %100 = vector.shape_cast %99 : vector<16xf32> to vector<16x1xf32>
    %101 = vector.broadcast %100 : vector<16x1xf32> to vector<16x16xf32>
    %102 = arith.subf %98, %101 : vector<16x16xf32>
    %103 = math.exp %102 : vector<16x16xf32>
    %cst_53 = arith.constant dense<0.000000e+00> : vector<16xf32>
    %104 = vector.multi_reduction <add>, %103, %cst_53 [1] : vector<16x16xf32> to vector<16xf32>
    %105 = vector.shape_cast %104 : vector<16xf32> to vector<16x1xf32>
    %106 = tpu.reciprocal %105 : vector<16x1xf32> -> vector<16x1xf32>
    %107 = vector.broadcast %106 : vector<16x1xf32> to vector<16x16xf32>
    %108 = arith.mulf %103, %107 : vector<16x16xf32>
    %cst_54 = arith.constant dense<0.000000e+00> : vector<16x8xf32>
    %109 = tpu.matmul %108, %92, %cst_54 {dimension_numbers = #tpu.dot_dimension_numbers<[1], [0], [0], [1], [0, 0, 1, 1], [], []>} : vector<16x16xf32>, vector<16x8xf32>, vector<16x8xf32> -> vector<16x8xf32>
    %110 = vector.extract_strided_slice %21 {offsets = [0, 48], sizes = [16, 16], strides = [1, 1]} : vector<16x64xf32> to vector<16x16xf32>
    %111 = vector.extract_strided_slice %44 {offsets = [0, 16], sizes = [16, 8], strides = [1, 1]} : vector<16x32xf32> to vector<16x8xf32>
    %112 = vector.extract_strided_slice %44 {offsets = [0, 24], sizes = [16, 8], strides = [1, 1]} : vector<16x32xf32> to vector<16x8xf32>
    %113 = tpu.concatenate %111, %42 in 1 : vector<16x8xf32>, vector<16x8xf32> -> vector<16x16xf32>
    %cst_55 = arith.constant dense<0.000000e+00> : vector<16x16xf32>
    %114 = tpu.matmul %110, %113, %cst_55 {dimension_numbers = #tpu.dot_dimension_numbers<[1], [1], [0], [0], [0, 0, 1, 0], [], []>} : vector<16x16xf32>, vector<16x16xf32>, vector<16x16xf32> -> vector<16x16xf32>
    %115 = vector.broadcast %46 : f32 to vector<16x16xf32>
    %116 = arith.mulf %114, %115 : vector<16x16xf32>
    %cst_56 = arith.constant 0xFF800000 : f32
    %117 = vector.broadcast %cst_56 : f32 to vector<16x16xf32>
    %118 = arith.select %49, %116, %117 : vector<16x16xi1>, vector<16x16xf32>
    %cst_57 = arith.constant dense<0xFF800000> : vector<16xf32>
    %119 = vector.multi_reduction <maximumf>, %118, %cst_57 [1] : vector<16x16xf32> to vector<16xf32>
    %120 = vector.shape_cast %119 : vector<16xf32> to vector<16x1xf32>
    %121 = vector.broadcast %120 : vector<16x1xf32> to vector<16x16xf32>
    %122 = arith.subf %118, %121 : vector<16x16xf32>
    %123 = math.exp %122 : vector<16x16xf32>
    %cst_58 = arith.constant dense<0.000000e+00> : vector<16xf32>
    %124 = vector.multi_reduction <add>, %123, %cst_58 [1] : vector<16x16xf32> to vector<16xf32>
    %125 = vector.shape_cast %124 : vector<16xf32> to vector<16x1xf32>
    %126 = tpu.reciprocal %125 : vector<16x1xf32> -> vector<16x1xf32>
    %127 = vector.broadcast %126 : vector<16x1xf32> to vector<16x16xf32>
    %128 = arith.mulf %123, %127 : vector<16x16xf32>
    %cst_59 = arith.constant dense<0.000000e+00> : vector<16x8xf32>
    %129 = tpu.matmul %128, %112, %cst_59 {dimension_numbers = #tpu.dot_dimension_numbers<[1], [0], [0], [1], [0, 0, 1, 1], [], []>} : vector<16x16xf32>, vector<16x8xf32>, vector<16x8xf32> -> vector<16x8xf32>
    %130 = tpu.concatenate %69, %89, %109, %129 in 1 : vector<16x8xf32>, vector<16x8xf32>, vector<16x8xf32>, vector<16x8xf32> -> vector<16x32xf32>
    %c0_60 = arith.constant 0 : index
    %c0_61 = arith.constant 0 : index
    %131 = vector.load %arg15[%c0_60, %c0_61] : memref<16x32xf32, #tpu.memory_space<vmem>>, vector<16x32xf32>
    tpu.vector_store %arg15[%c0_60, %c0_61], %130 {strides = array<i32>} : memref<16x32xf32, #tpu.memory_space<vmem>>, vector<16x32xf32>,
    %c0_62 = arith.constant 0 : index
    %c0_63 = arith.constant 0 : index
    %132 = vector.load %arg9[%c0_62, %c0_63] : memref<32x32xf32, #tpu.memory_space<vmem>>, vector<32x32xf32>
    %cst_64 = arith.constant dense<0.000000e+00> : vector<16x32xf32>
    %133 = tpu.matmul %130, %132, %cst_64 {dimension_numbers = #tpu.dot_dimension_numbers<[1], [1], [0], [0], [0, 0, 1, 0], [], []>} : vector<16x32xf32>, vector<32x32xf32>, vector<16x32xf32> -> vector<16x32xf32>
    %c0_65 = arith.constant 0 : index
    %c0_66 = arith.constant 0 : index
    %134 = vector.load %arg14[%c0_65, %c0_66] : memref<16x32xf32, #tpu.memory_space<vmem>>, vector<16x32xf32>
    tpu.vector_store %arg14[%c0_65, %c0_66], %133 {strides = array<i32>} : memref<16x32xf32, #tpu.memory_space<vmem>>, vector<16x32xf32>,
    return
  }
}

</mosaic_0001>

<bundles_post_ra>
// kernel: mla_forward.1
= control target key start
LH: loop header
LB: loop body
LE: loop exit
PB: predicated region body
PF: predicated region fallthrough
CT: control target
= control target key end

     0   :  { %21 = vsyncpa [#allocation3], 0  ;;  %vm55_vm0 = vcmask 261120   ;;  %s2584_s0 = inlined_call_operand.vmem [shape: f32[16,32], index: 0, kind: input, shape index: {}]   ;;  %s2585_s1 = inlined_call_operand.vmem [shape: f32[16,16], index: 1, kind: input, shape index: {}]   ;;  %s2586_s2 = inlined_call_operand.vmem [shape: f32[16,32], index: 2, kind: input, shape index: {}]   ;;  %s2587_s3 = inlined_call_operand.vmem [shape: f32[64,16], index: 3, kind: input, shape index: {}]   ;;  %s2588_s4 = inlined_call_operand.vmem [shape: f32[64,16], index: 4, kind: input, shape index: {}]   ;;  %s2589_s5 = inlined_call_operand.vmem [shape: f32[16,32], index: 5, kind: input, shape index: {}]   ;;  %s2590_s6 = inlined_call_operand.vmem [shape: f32[8,32], index: 6, kind: input, shape index: {}]   ;;  %s2591_s7 = inlined_call_operand.vmem [shape: f32[8,32], index: 7, kind: input, shape index: {}]   ;;  %s2592_s8 = inlined_call_operand.vmem [shape: f32[32,16], index: 8, kind: input, shape index: {}]   ;;  %s2593_s9 = inlined_call_operand.vmem [shape: f32[32,32], index: 9, kind: input, shape index: {}]   ;;  %s2594_s10 = inlined_call_operand.vmem [shape: f32[16,64], index: 10, kind: input, shape index: {}]   ;;  %s2595_s11 = inlined_call_operand.vmem [shape: f32[16,64], index: 11, kind: input, shape index: {}]   ;;  %s2596_s12 = inlined_call_operand.vmem [shape: f32[16,8], index: 12, kind: input, shape index: {}]   ;;  %s2597_s13 = inlined_call_operand.vmem [shape: f32[16,8], index: 13, kind: input, shape index: {}]   ;;  %s2598_s14 = inlined_call_operand.hbm [shape: f32[16,32], index: 14, kind: output, shape index: {0}]   ;;  %s2599_s15 = inlined_call_operand.hbm [shape: f32[16,32], index: 15, kind: output, shape index: {1}]  }
   0x1   :  { %v54_v0 = vld [vmem:[%s2586_s2 + $0x8] sm:$0xff]  ;;  %v53_v1 = vld [vmem:[%s2586_s2] sm:$0xff] }
   0x2   :  { %v2209_v2 = vld [vmem:[%s2584_s0] sm:$0xff]  ;;  %1874 = vmatprep.subr.msk.mxu1 %vm55_vm0, %v54_v0 }
   0x3   :  { %1878 = vmatprep.mubr.msk.f32.mxu1 %vm55_vm0, %v2209_v2 }
   0x4   :  { %22 = vsyncpa [#allocation5], 0  ;;  %1875 = vmatpush3.xpose.msk.msra.mxu1 %vm55_vm0, %v54_v0  ;;  %v2220_v3 = vld [vmem:[%s2584_s0 + $0x8] sm:$0xff]  ;;  %vm145_vm1 = vcmask 130048   ;;  %v168_v4 = vld [vmem:[%s2587_s3 + $0x38] sm:$0xff]  ;;  %s2109_s27 = smov 8  }
   0x5   :  { %1876 = vmatprep.subr.msk.mxu1 %vm55_vm0, %v53_v1  ;;  %v281_v5 = vld [vmem:[%s2588_s4 + $0x38] sm:$0xff]  ;;  %v167_v6 = vld [vmem:[%s2587_s3 + $0x30] sm:$0xff]  ;;  %v166_v8 = vld [vmem:[%s2587_s3 + $0x28] sm:$0xff]  ;;  %vm767_vm2 = vcmask 64512   ;;  %s2111_s29 = smov 112   ;;  %s2112_s30 = smov 96  }
   0x6   :  { %1900 = vmatprep.subr.msk.mxu0 %vm145_vm1, %v281_v5  ;;  %v280_v7 = vld [vmem:[%s2588_s4 + $0x30] sm:$0xff]  ;;  %v279_v15 = vld [vmem:[%s2588_s4 + $0x28] sm:$0xff]  ;;  %v165_v16 = vld [vmem:[%s2587_s3 + $0x20] sm:$0xff]  ;;  %s2113_s0 = smov 104   ;;  %s2114_s16 = smov 80   ;;  %vm1590_vm5 = vcmask 195584  }
   0x7   :  { %1901 = vmatpush3.xpose.msk.msra.mxu0 %vm145_vm1, %v281_v5  ;;  %v278_v17 = vld [vmem:[%s2588_s4 + $0x20] sm:$0xff]  ;;  %v164_v18 = vld [vmem:[%s2587_s3 + $0x18] sm:$0xff]  ;;  %v163_v20 = vld [vmem:[%s2587_s3 + $0x10] sm:$0xff]  ;;  %s2116_s23 = smov 24  }
   0x8   :  { %1877 = vmatpush3.xpose.msk.msra.mxu1 %vm55_vm0, %v53_v1  ;;  %1902 = vmatprep.subr.msk.mxu0 %vm145_vm1, %v280_v7  ;;  %v277_v19 = vld [vmem:[%s2588_s4 + $0x18] sm:$0xff]  ;;  %v276_v21 = vld [vmem:[%s2588_s4 + $0x10] sm:$0xff]  ;;  %v162_v22 = vld [vmem:[%s2587_s3 + $0x8] sm:$0xff] }
   0x9   :  { %1881 = vmatprep.subr.msk.mxu1 %vm145_vm1, %v168_v4  ;;  %v275_v23 = vld [vmem:[%s2588_s4 + $0x8] sm:$0xff]  ;;  %v161_v24 = vld [vmem:[%s2587_s3] sm:$0xff]  ;;  %v661_v60 = vld [vmem:[%s2592_s8 + $0x18] sm:$0xff] }
   0xa   :  { %v274_v25 = vld [vmem:[%s2588_s4] sm:$0xff]  ;;  %v392_v26 = vld [vmem:[%s2589_s5 + $0x8] sm:$0xff]  ;;  %v660_v61 = vld [vmem:[%s2592_s8 + $0x10] sm:$0xff] }
   0xb   :  { %1879 = vmatmul.mubr.msk.f32.vlgmr.msra.gmra.mxu1 %vm55_vm0, %v2220_v3  ;;  %1903 = vmatpush3.xpose.msk.msra.mxu0 %vm145_vm1, %v280_v7  ;;  %v391_v37 = vld [vmem:[%s2589_s5] sm:$0xff]  ;;  %v382_v40 = vld [vmem:[%s2594_s10 + $0x8] sm:$0xff] }
   0xc   :  { %1882 = vmatpush3.xpose.msk.msra.mxu1 %vm145_vm1, %v168_v4  ;;  %1904 = vmatprep.subr.msk.mxu0 %vm145_vm1, %v279_v15  ;;  %v569_v38 = vld [vmem:[%s2591_s7] sm:$0xff]  ;;  %v386_v41 = vld [vmem:[%s2595_s11 + $0x8] sm:$0xff] }
   0xd   :  { %1883 = vmatprep.subr.msk.mxu1 %vm145_vm1, %v167_v6  ;;  %v490_v39 = vld [vmem:[%s2590_s6] sm:$0xff]  ;;  %v659_v62 = vld [vmem:[%s2592_s8 + $0x8] sm:$0xff]  ;;  %s2115_s6 = smov 16  }
   0xe   :  { %v381_v44 = vld [vmem:[%s2594_s10] sm:$0xff]  ;;  %v653_v1 = vld [vmem:[%s2597_s13 + $0x8] sm:$0xff] }
   0xf   :  { %1905 = vmatpush3.xpose.msk.msra.mxu0 %vm145_vm1, %v279_v15  ;;  %v385_v45 = vld [vmem:[%s2595_s11] sm:$0xff] }
  0x10   :  { %1884 = vmatpush3.xpose.msk.msra.mxu1 %vm145_vm1, %v167_v6  ;;  %1906 = vmatprep.subr.msk.mxu0 %vm145_vm1, %v278_v17  ;;  %v658_v63 = vld [vmem:[%s2592_s8] sm:$0xff] }
  0x11   :  { %1885 = vmatprep.subr.msk.mxu1 %vm145_vm1, %v166_v8  ;;  %v652_v4 = vld [vmem:[%s2597_s13] sm:$0xff] }
  0x12   :  { %v648_v7 = vld [vmem:[%s2596_s12] sm:$0xff] }
  0x13   :  { %1907 = vmatpush3.xpose.msk.msra.mxu0 %vm145_vm1, %v278_v17 }
  0x14   :  { %1886 = vmatpush3.xpose.msk.msra.mxu1 %vm145_vm1, %v166_v8  ;;  %1908 = vmatprep.subr.msk.mxu0 %vm145_vm1, %v277_v19 }
  0x15   :  { %1887 = vmatprep.subr.msk.mxu1 %vm145_vm1, %v165_v16 }
  0x17   :  { %1909 = vmatpush3.xpose.msk.msra.mxu0 %vm145_vm1, %v277_v19 }
  0x18   :  { %1888 = vmatpush3.xpose.msk.msra.mxu1 %vm145_vm1, %v165_v16  ;;  %1910 = vmatprep.subr.msk.mxu0 %vm145_vm1, %v276_v21 }
  0x19   :  { %1889 = vmatprep.subr.msk.mxu1 %vm145_vm1, %v164_v18 }
  0x1b   :  { %1911 = vmatpush3.xpose.msk.msra.mxu0 %vm145_vm1, %v276_v21 }
  0x1c   :  { %1890 = vmatpush3.xpose.msk.msra.mxu1 %vm145_vm1, %v164_v18  ;;  %1912 = vmatprep.subr.msk.mxu0 %vm145_vm1, %v275_v23 }
  0x1d   :  { %1891 = vmatprep.subr.msk.mxu1 %vm145_vm1, %v163_v20 }
  0x1f   :  { %1913 = vmatpush3.xpose.msk.msra.mxu0 %vm145_vm1, %v275_v23 }
  0x20   :  { %1892 = vmatpush3.xpose.msk.msra.mxu1 %vm145_vm1, %v163_v20  ;;  %1914 = vmatprep.subr.msk.mxu0 %vm145_vm1, %v274_v25 }
  0x21   :  { %1893 = vmatprep.subr.msk.mxu1 %vm145_vm1, %v162_v22 }
  0x23   :  { %1915 = vmatpush3.xpose.msk.msra.mxu0 %vm145_vm1, %v274_v25 }
  0x24   :  { %1894 = vmatpush3.xpose.msk.msra.mxu1 %vm145_vm1, %v162_v22  ;;  %1926 = vmatprep.subr.msk.mxu0 %vm55_vm0, %v490_v39 }
  0x25   :  { %1895 = vmatprep.subr.msk.mxu1 %vm145_vm1, %v161_v24 }
  0x28   :  { %1896 = vmatpush3.xpose.msk.msra.mxu1 %vm145_vm1, %v161_v24 }
  0x29   :  { %1919 = vmatprep.subr.msk.mxu1 %vm55_vm0, %v392_v26 }
  0xcb   :  { %v1880_v9 = vpop.f32.mrf.mxu1 }
  0xcc   :  { %v144_v12 = vmul.f32 %v1880_v9, %v1880_v9 }
  0xcd   :  { %v134_v10 = vpop.f32.mrf.mxu1 }
  0xce   :  { %v143_v11 = vmul.f32 %v134_v10, %v134_v10  ;;  %v149_v14 = vsel %vm145_vm1, %v144_v12, 0.0 }
  0xd0   :  { %v146_v13 = vsel %vm145_vm1, %v143_v11, 0.0 }
  0xd1   :  { %147 = vadd.xlane.f32.xlu0 %v146_v13 }
  0xd5   :  { %150 = vadd.xlane.f32.xlu0 %v149_v14 }
 0x15a   :  { %v148_v27 = vpop.xlane.xlu0 %147 }
 0x15b   :  { %v153_v28 = vmul.f32 0.0625, %v148_v27 }
 0x15d   :  { %v155_v29 = vadd.f32 1.1920929e-07, %v153_v28 }
 0x15e   :  { %v151_v30 = vpop.xlane.xlu0 %150 }
 0x15f   :  { %2025 = vrsqrt.f32 %v155_v29  ;;  %v154_v31 = vmul.f32 0.0625, %v151_v30  ;;  %v2429_v30 = vld [vmem:[%s2585_s1 + $0x8] sm:$0xff] }
 0x160   :  { %vm758_vm3 = vcmp.ne.f32.partialorder %v2429_v30, 0.0 }
 0x161   :  { %v156_v32 = vadd.f32 1.1920929e-07, %v154_v31  ;;  %v2434_v31 = vld [vmem:[%s2585_s1] sm:$0xff]  ;;  %s2110_s1 = smov 120  }
 0x162   :  { %vm757_vm4 = vcmp.ne.f32.partialorder %v2434_v31, 0.0 }
 0x163   :  { %2027 = vrsqrt.f32 %v156_v32 }
 0x16c   :  { %v2026_v33 = vpop.eup %2025 }
 0x16d   :  { %v159_v34 = vmul.f32 %v2026_v33, %v134_v10 }
 0x16f   :  { %1897 = vmatprep.mubr.msk.f32.mxu1 %vm145_vm1, %v159_v34  ;;  %1916 = vmatprep.mubr.msk.f32.mxu0 %vm145_vm1, %v159_v34 }
 0x170   :  { %v2028_v35 = vpop.eup %2027 }
 0x171   :  { %v160_v36 = vmul.f32 %v2028_v35, %v1880_v9 }
 0x173   :  { %1898 = vmatmul.mubr.msk.f32.vlgmr.msra.gmra.mxu1 %vm145_vm1, %v160_v36  ;;  %1917 = vmatmul.mubr.msk.f32.vlgmr.msra.gmra.mxu0 %vm145_vm1, %v160_v36 }
 0x174   :  { %1920 = vmatpush3.xpose.msk.msra.mxu1 %vm55_vm0, %v392_v26  ;;  %1923 = vmatprep.mubr.msk.f32.mxu1 %vm55_vm0, %v2209_v2 }
 0x175   :  { %1921 = vmatprep.subr.msk.mxu1 %vm55_vm0, %v391_v37  ;;  %1928 = vmatprep.mubr.msk.f32.mxu0 %vm55_vm0, %v2209_v2 }
 0x176   :  { %1927 = vmatpush3.xpose.msk.msra.mxu0 %vm55_vm0, %v490_v39 }
 0x177   :  { %1936 = vmatprep.subr.msk.mxu0 %vm145_vm1, %v661_v60 }
 0x178   :  { %1922 = vmatpush3.xpose.msk.msra.mxu1 %vm55_vm0, %v391_v37 }
 0x179   :  { %1931 = vmatprep.subr.msk.mxu1 %vm55_vm0, %v569_v38  ;;  %1929 = vmatmul.mubr.msk.f32.vlgmr.msra.gmra.mxu0 %vm55_vm0, %v2220_v3 }
 0x17a   :  { %1937 = vmatpush3.xpose.msk.msra.mxu0 %vm145_vm1, %v661_v60 }
 0x17b   :  { %1924 = vmatmul.mubr.msk.f32.vlgmr.msra.gmra.mxu1 %vm55_vm0, %v2220_v3  ;;  %1938 = vmatprep.subr.msk.mxu0 %vm145_vm1, %v660_v61 }
 0x17c   :  { %1933 = vmatprep.mubr.msk.f32.mxu1 %vm55_vm0, %v2209_v2  ;;  %1932 = vmatpush3.xpose.msk.msra.mxu1 %vm55_vm0, %v569_v38  ;;  %v649_v2 = vld [vmem:[%s2596_s12 + $0x8] sm:$0xff] }
 0x17e   :  { %1939 = vmatpush3.xpose.msk.msra.mxu0 %vm145_vm1, %v660_v61 }
 0x17f   :  { %1934 = vmatmul.mubr.msk.f32.vlgmr.msra.gmra.mxu1 %vm55_vm0, %v2220_v3  ;;  %1940 = vmatprep.subr.msk.mxu0 %vm145_vm1, %v659_v62 }
 0x182   :  { %1941 = vmatpush3.xpose.msk.msra.mxu0 %vm145_vm1, %v659_v62 }
 0x183   :  { %1942 = vmatprep.subr.msk.mxu0 %vm145_vm1, %v658_v63 }
 0x186   :  { %1943 = vmatpush3.xpose.msk.msra.mxu0 %vm145_vm1, %v658_v63 }
 0x233   :  { %v1899_v42 = vpop.f32.mrf.mxu1  ;;  %v1918_v43 = vpop.f32.mrf.mxu0 }
 0x234   :  { %v384_v46 = vmul.f32 %v1899_v42, %v382_v40  ;;  %v388_v47 = vmul.f32 %v1918_v43, %v386_v41 }
 0x235   :  { %v265_v48 = vpop.f32.mrf.mxu1  ;;  %v372_v49 = vpop.f32.mrf.mxu0 }
 0x236   :  { %v2354_v50 = vadd.f32 %v388_v47, %v384_v46  ;;  %v383_v51 = vmul.f32 %v381_v44, %v265_v48  ;;  %v387_v52 = vmul.f32 %v385_v45, %v372_v49 }
 0x238   :  { %v2356_v53 = vadd.f32 %v387_v52, %v383_v51 }
 0x239   :  { %v1930_v6 = vpop.f32.mrf.mxu0 }
 0x23a   :  { %1951 = vmatprep.mubr.msk.f32.mxu1 %vm145_vm1, %v2356_v53  ;;  %v651_v8 = vmul.f32 %v1930_v6, %v649_v2 }
 0x23b   :  { %v1925_v54 = vpop.f32.mrf.mxu1  ;;  %v560_v10 = vpop.f32.mrf.mxu0 }
 0x23c   :  { %v475_v57 = vmul.f32 %v1925_v54, %v1925_v54  ;;  %v650_v12 = vmul.f32 %v648_v7, %v560_v10 }
 0x23d   :  { %v465_v55 = vpop.f32.mrf.mxu1 }
 0x23e   :  { %v474_v56 = vmul.f32 %v465_v55, %v465_v55  ;;  %v479_v59 = vsel %vm145_vm1, %v475_v57, 0.0 }
 0x23f   :  { %v1935_v0 = vpop.f32.mrf.mxu1 }
 0x240   :  { %v476_v58 = vsel %vm145_vm1, %v474_v56, 0.0  ;;  %v655_v5 = vmul.f32 %v1935_v0, %v653_v1 }
 0x241   :  { %477 = vadd.xlane.f32.xlu1 %v476_v58  ;;  %v639_v3 = vpop.f32.mrf.mxu1 }
 0x242   :  { %v654_v9 = vmul.f32 %v652_v4, %v639_v3  ;;  %v657_v11 = vadd.f32 %v655_v5, %v651_v8 }
 0x244   :  { %v656_v13 = vadd.f32 %v654_v9, %v650_v12  ;;  %763 = vrot.lane.b32.xlu0 %v657_v11, %s2109_s27 }
 0x245   :  { %480 = vadd.xlane.f32.xlu1 %v479_v59 }
 0x256   :  { %761 = vrot.lane.b32.xlu1 %v656_v13, %s2109_s27 }
 0x2b6   :  { %v2398_v24 = vpop.permute.xlu0 %763 }
 0x2ca   :  { %v478_v14 = vpop.xlane.xlu1 %477 }
 0x2cb   :  { %v482_v15 = vmul.f32 0.0625, %v478_v14 }
 0x2cd   :  { %v484_v16 = vadd.f32 1.1920929e-07, %v482_v15 }
 0x2ce   :  { %v481_v17 = vpop.xlane.xlu1 %480 }
 0x2cf   :  { %2029 = vrsqrt.f32 %v484_v16  ;;  %v483_v18 = vmul.f32 0.0625, %v481_v17 }
 0x2d1   :  { %v485_v19 = vadd.f32 1.1920929e-07, %v483_v18 }
 0x2d2   :  { %v2407_v27 = vpop.permute.xlu1 %761 }
 0x2d3   :  { %2031 = vrsqrt.f32 %v485_v19 }
 0x2dc   :  { %v2030_v20 = vpop.eup %2029 }
 0x2dd   :  { %v488_v21 = vmul.f32 %v2030_v20, %v465_v55 }
 0x2df   :  { %1944 = vmatprep.mubr.msk.f32.mxu0 %vm145_vm1, %v488_v21 }
 0x2e0   :  { %v2032_v22 = vpop.eup %2031 }
 0x2e1   :  { %v489_v23 = vmul.f32 %v2032_v22, %v1925_v54 }
 0x2e3   :  { %1945 = vmatmul.mubr.msk.f32.vlgmr.msra.gmra.mxu0 %vm145_vm1, %v489_v23 }
 0x3a3   :  { %v2400_v25 = vpop.f32.mrf.mxu0 }
 0x3a4   :  { %v2405_v26 = vsel %vm767_vm2, %v2400_v25, %v2398_v24 }
 0x3a5   :  { %v2409_v28 = vpop.f32.mrf.mxu0  ;;  %1947 = vmatprep.subr.msk.mxu1 %vm145_vm1, %v2405_v26 }
 0x3a6   :  { %1948 = vmatpush3.xpose.msk.msra.mxu1 %vm145_vm1, %v2405_v26  ;;  %v2418_v29 = vsel %vm767_vm2, %v2409_v28, %v2407_v27 }
 0x3a7   :  { %1949 = vmatprep.subr.msk.mxu1 %vm145_vm1, %v2418_v29 }
 0x3aa   :  { %1950 = vmatpush3.xpose.msk.msra.mxu1 %vm145_vm1, %v2418_v29 }
 0x3ad   :  { %1952 = vmatmul.mubr.msk.f32.vlgmr.msra.gmra.mxu1 %vm145_vm1, %v2354_v50 }
 0x46d   :  { %v1953_v32 = vpop.f32.mrf.mxu1 }
 0x46e   :  { %v858_v33 = vmul.f32 0.25, %v1953_v32 }
 0x46f   :  { %v848_v34 = vpop.f32.mrf.mxu1 }
 0x470   :  { %v857_v35 = vmul.f32 0.25, %v848_v34  ;;  %v860_v36 = vsel %vm758_vm3, %v858_v33, -inf }
 0x471   :  { %v864_v37 = vsel %vm145_vm1, %v860_v36, -inf }
 0x472   :  { %865 = vmax.xlane.f32.xlu0 %v864_v37  ;;  %v859_v38 = vsel %vm757_vm4, %v857_v35, -inf }
 0x473   :  { %v861_v39 = vsel %vm145_vm1, %v859_v38, -inf }
 0x474   :  { %862 = vmax.xlane.f32.xlu1 %v861_v39 }
 0x4fb   :  { %v866_v40 = vpop.xlane.xlu0 %865 }
 0x4fc   :  { %v868_v41 = vsub.f32 %v860_v36, %v866_v40 }
 0x4fd   :  { %v863_v42 = vpop.xlane.xlu1 %862 }
 0x4fe   :  { %v871_v43 = vmul.f32 1.442695, %v868_v41  ;;  %v867_v44 = vsub.f32 %v859_v38, %v863_v42 }
 0x500   :  { %2033 = vpow2.f32 %v871_v43  ;;  %v869_v45 = vmul.f32 1.442695, %v867_v44 }
 0x502   :  { %2035 = vpow2.f32 %v869_v45 }
 0x50d   :  { %v2034_v46 = vpop.eup %2033 }
 0x50e   :  { %v876_v47 = vsel %vm145_vm1, %v2034_v46, 0.0 }
 0x50f   :  { %v2036_v48 = vpop.eup %2035  ;;  %877 = vadd.xlane.f32.xlu1 %v876_v47 }
 0x510   :  { %v873_v49 = vsel %vm145_vm1, %v2036_v48, 0.0 }
 0x511   :  { %874 = vadd.xlane.f32.xlu0 %v873_v49 }
 0x520   :  { %885 = vrot.lane.b32.xlu1 %v2409_v28, %s2110_s1 }
 0x524   :  { %972 = vrot.lane.b32.xlu1 %v2356_v53, %s2111_s29 }
 0x527   :  { %887 = vrot.lane.b32.xlu0 %v2400_v25, %s2110_s1 }
 0x528   :  { %974 = vrot.lane.b32.xlu1 %v2354_v50, %s2111_s29 }
 0x598   :  { %v878_v51 = vpop.xlane.xlu1 %877 }
 0x599   :  { %2037 = vrcp.f32 %v878_v51 }
 0x59a   :  { %v875_v52 = vpop.xlane.xlu0 %874 }
 0x59b   :  { %2039 = vrcp.f32 %v875_v52 }
 0x59c   :  { %v886_v55 = vpop.permute.xlu1 %885 }
 0x59e   :  { %v888_v54 = vpop.permute.xlu0 %887 }
 0x59f   :  { %1954 = vmatprep.subr.mxu1 %v888_v54  ;;  %1968 = vmatprep.subr.mxu0 %v888_v54 }
 0x5a0   :  { %1955 = vmatpush3.msra.mxu1 %v888_v54  ;;  %1969 = vmatpush3.msra.mxu0 %v888_v54  ;;  %v973_v60 = vpop.permute.xlu1 %972 }
 0x5a1   :  { %1956 = vmatprep.subr.mxu1 %v886_v55  ;;  %1970 = vmatprep.subr.mxu0 %v886_v55 }
 0x5a2   :  { %1957 = vmatpush3.msra.mxu1 %v886_v55  ;;  %1971 = vmatpush3.msra.mxu0 %v886_v55 }
 0x5a3   :  { %1961 = vmatprep.subr.msk.mxu1 %vm145_vm1, %v2405_v26 }
 0x5a4   :  { %v975_v61 = vpop.permute.xlu1 %974 }
 0x5a6   :  { %v2038_v56 = vpop.eup %2037 }
 0x5a7   :  { %v882_v59 = vmul.f32 %v2038_v56, %v2034_v46 }
 0x5a8   :  { %v2040_v57 = vpop.eup %2039 }
 0x5a9   :  { %v881_v58 = vmul.f32 %v2040_v57, %v2036_v48 }
 0x5ab   :  { %1958 = vmatprep.mubr.msk.f32.mxu1 %vm145_vm1, %v881_v58 }
 0x5ac   :  { %1959 = vmatmul.mubr.msk.f32.vlgmr.msra.gmra.mxu1 %vm145_vm1, %v882_v59 }
 0x5ad   :  { %1962 = vmatpush3.xpose.msk.msra.mxu1 %vm145_vm1, %v2405_v26  ;;  %1965 = vmatprep.mubr.msk.f32.mxu1 %vm145_vm1, %v973_v60 }
 0x5ae   :  { %1963 = vmatprep.subr.msk.mxu1 %vm145_vm1, %v2418_v29 }
 0x5b1   :  { %1964 = vmatpush3.xpose.msk.msra.mxu1 %vm145_vm1, %v2418_v29 }
 0x5b4   :  { %1966 = vmatmul.mubr.msk.f32.vlgmr.msra.gmra.mxu1 %vm145_vm1, %v975_v61 }
 0x66c   :  { %v2464_v62 = vpop.f32.mrf.mxu1 }
 0x66e   :  { %v2466_v63 = vpop.f32.mrf.mxu1 }
 0x674   :  { %v1967_v0 = vpop.f32.mrf.mxu1 }
 0x675   :  { %v1056_v1 = vmul.f32 0.25, %v1967_v0 }
 0x676   :  { %v1046_v2 = vpop.f32.mrf.mxu1 }
 0x677   :  { %v1055_v3 = vmul.f32 0.25, %v1046_v2  ;;  %v1058_v4 = vsel %vm758_vm3, %v1056_v1, -inf }
 0x678   :  { %v1062_v5 = vsel %vm145_vm1, %v1058_v4, -inf }
 0x679   :  { %1063 = vmax.xlane.f32.xlu1 %v1062_v5  ;;  %v1057_v6 = vsel %vm757_vm4, %v1055_v3, -inf }
 0x67a   :  { %v1059_v7 = vsel %vm145_vm1, %v1057_v6, -inf }
 0x67b   :  { %1060 = vmax.xlane.f32.xlu0 %v1059_v7 }
 0x68a   :  { %1162 = vrot.lane.b32.xlu1 %v2409_v28, %s2111_s29 }
 0x68e   :  { %1170 = vrot.lane.b32.xlu1 %v2356_v53, %s2112_s30 }
 0x692   :  { %1172 = vrot.lane.b32.xlu1 %v2354_v50, %s2112_s30 }
 0x702   :  { %v1064_v8 = vpop.xlane.xlu1 %1063 }
 0x703   :  { %v1066_v9 = vsub.f32 %v1058_v4, %v1064_v8 }
 0x704   :  { %v1061_v10 = vpop.xlane.xlu0 %1060 }
 0x705   :  { %v1069_v11 = vmul.f32 1.442695, %v1066_v9  ;;  %v1065_v12 = vsub.f32 %v1057_v6, %v1061_v10 }
 0x706   :  { %v1163_v22 = vpop.permute.xlu1 %1162 }
 0x707   :  { %2041 = vpow2.f32 %v1069_v11  ;;  %v1067_v13 = vmul.f32 1.442695, %v1065_v12  ;;  %v2492_v34 = vsel %vm767_vm2, %v1163_v22, %v2407_v27 }
 0x709   :  { %2043 = vpow2.f32 %v1067_v13 }
 0x70a   :  { %v1171_v33 = vpop.permute.xlu1 %1170 }
 0x714   :  { %v2042_v14 = vpop.eup %2041 }
 0x715   :  { %v1074_v15 = vsel %vm145_vm1, %v2042_v14, 0.0 }
 0x716   :  { %v2044_v16 = vpop.eup %2043  ;;  %1075 = vadd.xlane.f32.xlu0 %v1074_v15 }
 0x717   :  { %v1071_v17 = vsel %vm145_vm1, %v2044_v16, 0.0 }
 0x71a   :  { %1072 = vadd.xlane.f32.xlu0 %v1071_v17 }
 0x730   :  { %1164 = vrot.lane.b32.xlu0 %v2400_v25, %s2111_s29 }
 0x79f   :  { %v1076_v18 = vpop.xlane.xlu0 %1075 }
 0x7a0   :  { %2045 = vrcp.f32 %v1076_v18 }
 0x7a3   :  { %v1073_v19 = vpop.xlane.xlu0 %1072 }
 0x7a4   :  { %2047 = vrcp.f32 %v1073_v19 }
 0x7a7   :  { %v1165_v20 = vpop.permute.xlu0 %1164 }
 0x7a8   :  { %v2484_v21 = vsel %vm767_vm2, %v1165_v20, %v2398_v24  ;;  %v1173_v24 = vpop.permute.xlu1 %1172 }
 0x7a9   :  { %1975 = vmatprep.subr.msk.mxu0 %vm145_vm1, %v2484_v21 }
 0x7ad   :  { %v2046_v23 = vpop.eup %2045 }
 0x7ae   :  { %v1080_v32 = vmul.f32 %v2046_v23, %v2042_v14 }
 0x7b1   :  { %v2048_v26 = vpop.eup %2047 }
 0x7b2   :  { %v1079_v29 = vmul.f32 %v2048_v26, %v2044_v16  ;;  %v1598_v26 = vld [vmem:[%s2593_s9 + $0x18] sm:$0xff] }
 0x7b4   :  { %1972 = vmatprep.mubr.msk.f32.mxu0 %vm145_vm1, %v1079_v29  ;;  %v1597_v29 = vld [vmem:[%s2593_s9 + $0x10] sm:$0xff] }
 0x7b5   :  { %1973 = vmatmul.mubr.msk.f32.vlgmr.msra.gmra.mxu0 %vm145_vm1, %v1080_v32  ;;  %v1596_v32 = vld [vmem:[%s2593_s9 + $0x8] sm:$0xff] }
 0x7b6   :  { %1976 = vmatpush3.xpose.msk.msra.mxu0 %vm145_vm1, %v2484_v21  ;;  %1979 = vmatprep.mubr.msk.f32.mxu0 %vm145_vm1, %v1171_v33  ;;  %v1595_v33 = vld [vmem:[%s2593_s9] sm:$0xff]  ;;  %s2117_s9 = smov [#allocation4]  }
 0x7b7   :  { %1977 = vmatprep.subr.msk.mxu0 %vm145_vm1, %v2492_v34  ;;  %s1711_s24 = sshll.u32 %s2117_s9, 4  ;;  %s1712_s24 = int_to_ptr.vmem [resolvable:$true] %s1711_s24 }
 0x7b8   :  { %s2065_s25 = scalar_lea.vmem %s1712_s24, 256  ;;  %p2070_p1 = scmp.lt.s32.totalorder %s1712_s24, %s1712_s24 }
 0x7b9   :  { %p2066_p0 = scmp.ne.s32.totalorder %s1712_s24, %s2065_s25  ;;  %p2071_p2 = scmp.lt.s32.totalorder %s2065_s25, %s2065_s25 }
 0x7ba   :  { %1978 = vmatpush3.xpose.msk.msra.mxu0 %vm145_vm1, %v2492_v34 }
 0x7bb   :  { %p2072_p3 = por %p2071_p2, %p2070_p1 }
 0x7bd   :  { %1980 = vmatmul.mubr.msk.f32.vlgmr.msra.gmra.mxu0 %vm145_vm1, %v1173_v24  ;;  %p2073_p4 = pnand %p2072_p3, %p2066_p0 }
 0x875   :  { %v2502_v35 = vpop.f32.mrf.mxu0 }
 0x877   :  { %v2504_v36 = vpop.f32.mrf.mxu0 }
 0x87d   :  { %v1981_v27 = vpop.f32.mrf.mxu0 }
 0x87e   :  { %v1260_v37 = vmul.f32 0.25, %v1981_v27 }
 0x87f   :  { %v1250_v38 = vpop.f32.mrf.mxu0 }
 0x880   :  { %v1259_v39 = vmul.f32 0.25, %v1250_v38  ;;  %v1262_v40 = vsel %vm758_vm3, %v1260_v37, -inf }
 0x881   :  { %v1266_v41 = vsel %vm145_vm1, %v1262_v40, -inf }
 0x882   :  { %1267 = vmax.xlane.f32.xlu1 %v1266_v41  ;;  %v1261_v42 = vsel %vm757_vm4, %v1259_v39, -inf }
 0x883   :  { %v1263_v43 = vsel %vm145_vm1, %v1261_v42, -inf }
 0x884   :  { %1264 = vmax.xlane.f32.xlu0 %v1263_v43 }
 0x893   :  { %1285 = vrot.lane.b32.xlu1 %v2409_v28, %s2113_s0 }
 0x897   :  { %1372 = vrot.lane.b32.xlu1 %v2356_v53, %s2114_s16 }
 0x89b   :  { %1374 = vrot.lane.b32.xlu1 %v2354_v50, %s2114_s16 }
 0x90b   :  { %v1268_v44 = vpop.xlane.xlu1 %1267 }
 0x90c   :  { %v1270_v45 = vsub.f32 %v1262_v40, %v1268_v44 }
 0x90d   :  { %v1265_v46 = vpop.xlane.xlu0 %1264 }
 0x90e   :  { %v1273_v47 = vmul.f32 1.442695, %v1270_v45  ;;  %v1269_v48 = vsub.f32 %v1261_v42, %v1265_v46 }
 0x90f   :  { %v1286_v56 = vpop.permute.xlu1 %1285 }
 0x910   :  { %2049 = vpow2.f32 %v1273_v47  ;;  %v1271_v49 = vmul.f32 1.442695, %v1269_v48 }
 0x912   :  { %2051 = vpow2.f32 %v1271_v49 }
 0x913   :  { %v1373_v60 = vpop.permute.xlu1 %1372 }
 0x917   :  { %v1375_v61 = vpop.permute.xlu1 %1374 }
 0x91d   :  { %v2050_v51 = vpop.eup %2049 }
 0x91e   :  { %v1278_v52 = vsel %vm145_vm1, %v2050_v51, 0.0 }
 0x91f   :  { %v2052_v54 = vpop.eup %2051  ;;  %1279 = vadd.xlane.f32.xlu0 %v1278_v52 }
 0x920   :  { %v1275_v28 = vsel %vm145_vm1, %v2052_v54, 0.0 }
 0x923   :  { %1276 = vadd.xlane.f32.xlu0 %v1275_v28 }
 0x939   :  { %1287 = vrot.lane.b32.xlu0 %v2400_v25, %s2113_s0 }
 0x9a8   :  { %v1280_v53 = vpop.xlane.xlu0 %1279 }
 0x9a9   :  { %2053 = vrcp.f32 %v1280_v53 }
 0x9ac   :  { %v1277_v50 = vpop.xlane.xlu0 %1276 }
 0x9ad   :  { %2055 = vrcp.f32 %v1277_v50 }
 0x9b0   :  { %v1288_v55 = vpop.permute.xlu0 %1287 }
 0x9b1   :  { %1982 = vmatprep.subr.mxu1 %v1288_v55  ;;  %1996 = vmatprep.subr.mxu0 %v1288_v55 }
 0x9b2   :  { %1983 = vmatpush3.msra.mxu1 %v1288_v55  ;;  %1997 = vmatpush3.msra.mxu0 %v1288_v55 }
 0x9b3   :  { %1984 = vmatprep.subr.mxu1 %v1286_v56  ;;  %1998 = vmatprep.subr.mxu0 %v1286_v56 }
 0x9b4   :  { %1985 = vmatpush3.msra.mxu1 %v1286_v56  ;;  %1999 = vmatpush3.msra.mxu0 %v1286_v56 }
 0x9b5   :  { %1989 = vmatprep.subr.msk.mxu1 %vm145_vm1, %v2484_v21  ;;  %2003 = vmatprep.subr.msk.mxu0 %vm55_vm0, %v1598_v26 }
 0x9b6   :  { %v2054_v57 = vpop.eup %2053 }
 0x9b7   :  { %v1284_v59 = vmul.f32 %v2054_v57, %v2050_v51 }
 0x9ba   :  { %v2056_v58 = vpop.eup %2055 }
 0x9bb   :  { %v1283_v25 = vmul.f32 %v2056_v58, %v2052_v54 }
 0x9bd   :  { %1986 = vmatprep.mubr.msk.f32.mxu1 %vm145_vm1, %v1283_v25 }
 0x9be   :  { %1987 = vmatmul.mubr.msk.f32.vlgmr.msra.gmra.mxu1 %vm145_vm1, %v1284_v59 }
 0x9bf   :  { %1990 = vmatpush3.xpose.msk.msra.mxu1 %vm145_vm1, %v2484_v21  ;;  %1993 = vmatprep.mubr.msk.f32.mxu1 %vm145_vm1, %v1373_v60 }
 0x9c0   :  { %1991 = vmatprep.subr.msk.mxu1 %vm145_vm1, %v2492_v34 }
 0x9c3   :  { %1992 = vmatpush3.xpose.msk.msra.mxu1 %vm145_vm1, %v2492_v34 }
 0x9c6   :  { %1994 = vmatmul.mubr.msk.f32.vlgmr.msra.gmra.mxu1 %vm145_vm1, %v1375_v61 }
 0xa7e   :  { %v1988_v0 = vpop.f32.mrf.mxu1 }
 0xa80   :  { %v1363_v1 = vpop.f32.mrf.mxu1 }
 0xa86   :  { %v1995_v2 = vpop.f32.mrf.mxu1 }
 0xa87   :  { %v1456_v3 = vmul.f32 0.25, %v1995_v2 }
 0xa88   :  { %v1446_v4 = vpop.f32.mrf.mxu1 }
 0xa89   :  { %v1455_v5 = vmul.f32 0.25, %v1446_v4  ;;  %v1458_v6 = vsel %vm758_vm3, %v1456_v3, -inf }
 0xa8a   :  { %v1462_v7 = vsel %vm145_vm1, %v1458_v6, -inf }
 0xa8b   :  { %1463 = vmax.xlane.f32.xlu1 %v1462_v7  ;;  %v1457_v8 = vsel %vm757_vm4, %v1455_v5, -inf }
 0xa8c   :  { %v1459_v9 = vsel %vm145_vm1, %v1457_v8, -inf }
 0xa8d   :  { %1460 = vmax.xlane.f32.xlu0 %v1459_v9 }
 0xa9c   :  { %1566 = vrot.lane.b32.xlu1 %v2502_v35, %s2109_s27 }
 0xaa0   :  { %1572 = vrot.lane.b32.xlu1 %v1363_v1, %s2115_s6 }
 0xaa4   :  { %1574 = vrot.lane.b32.xlu1 %v1988_v0, %s2115_s6 }
 0xb14   :  { %v1464_v10 = vpop.xlane.xlu1 %1463 }
 0xb15   :  { %v1466_v11 = vsub.f32 %v1458_v6, %v1464_v10 }
 0xb16   :  { %v1461_v12 = vpop.xlane.xlu0 %1460 }
 0xb17   :  { %v1465_v30 = vsub.f32 %v1457_v8, %v1461_v12  ;;  %v1469_v13 = vmul.f32 1.442695, %v1466_v11 }
 0xb18   :  { %v1567_v35 = vpop.permute.xlu1 %1566 }
 0xb19   :  { %v1467_v14 = vmul.f32 1.442695, %v1465_v30  ;;  %v1587_v38 = vsel %vm767_vm2, %v2464_v62, %v1567_v35 }
 0xb1b   :  { %2057 = vpow2.f32 %v1467_v14 }
 0xb1c   :  { %2059 = vpow2.f32 %v1469_v13 }
 0xb28   :  { %v2058_v15 = vpop.eup %2057 }
 0xb29   :  { %v1471_v31 = vsel %vm145_vm1, %v2058_v15, 0.0  ;;  %v2060_v16 = vpop.eup %2059 }
 0xb2a   :  { %1472 = vadd.xlane.f32.xlu0 %v1471_v31  ;;  %v1474_v17 = vsel %vm145_vm1, %v2060_v16, 0.0 }
 0xb2e   :  { %1475 = vadd.xlane.f32.xlu0 %v1474_v17 }
 0xb44   :  { %1564 = vrot.lane.b32.xlu0 %v2504_v36, %s2109_s27  ;;  %v1573_v36 = vpop.permute.xlu1 %1572 }
 0xb48   :  { %v1575_v27 = vpop.permute.xlu1 %1574 }
 0xb49   :  { %v1589_v40 = vsel %vm145_vm1, %v1587_v38, %v1575_v27 }
 0xbb3   :  { %v1473_v18 = vpop.xlane.xlu0 %1472 }
 0xbb4   :  { %2061 = vrcp.f32 %v1473_v18 }
 0xbb7   :  { %v1476_v19 = vpop.xlane.xlu0 %1475 }
 0xbb8   :  { %2063 = vrcp.f32 %v1476_v19 }
 0xbbb   :  { %v1565_v37 = vpop.permute.xlu0 %1564 }
 0xbbc   :  { %v1586_v39 = vsel %vm767_vm2, %v2466_v63, %v1565_v37 }
 0xbbd   :  { %v1588_v43 = vsel %vm145_vm1, %v1586_v39, %v1573_v36 }
 0xbc1   :  { %v2062_v20 = vpop.eup %2061 }
 0xbc2   :  { %v1479_v21 = vmul.f32 %v2062_v20, %v2058_v15 }
 0xbc4   :  { %2000 = vmatprep.mubr.msk.f32.mxu0 %vm145_vm1, %v1479_v21 }
 0xbc5   :  { %v2064_v22 = vpop.eup %2063 }
 0xbc6   :  { %v1480_v23 = vmul.f32 %v2064_v22, %v2060_v16 }
 0xbc8   :  { %2001 = vmatmul.mubr.msk.f32.vlgmr.msra.gmra.mxu0 %vm145_vm1, %v1480_v23 }
 0xbc9   :  { %2004 = vmatpush3.xpose.msk.msra.mxu0 %vm55_vm0, %v1598_v26 }
 0xbca   :  { %2005 = vmatprep.subr.msk.mxu0 %vm55_vm0, %v1597_v29 }
 0xbcd   :  { %2006 = vmatpush3.xpose.msk.msra.mxu0 %vm55_vm0, %v1597_v29 }
 0xbce   :  { %2007 = vmatprep.subr.msk.mxu0 %vm55_vm0, %v1596_v32 }
 0xbd1   :  { %2008 = vmatpush3.xpose.msk.msra.mxu0 %vm55_vm0, %v1596_v32 }
 0xbd2   :  { %2009 = vmatprep.subr.msk.mxu0 %vm55_vm0, %v1595_v33 }
 0xbd5   :  { %2010 = vmatpush3.xpose.msk.msra.mxu0 %vm55_vm0, %v1595_v33 }
 0xc88   :  { %v2002_v34 = vpop.f32.mrf.mxu0 }
 0xc89   :  { %1582 = vrot.lane.b32.xlu1 %v2002_v34, %s2116_s23 }
 0xc8a   :  { %v1553_v24 = vpop.f32.mrf.mxu0 }
 0xc8b   :  { %1580 = vrot.lane.b32.xlu0 %v1553_v24, %s2116_s23 }
 0xcfb   :  { %v1583_v41 = vpop.permute.xlu1 %1582 }
 0xcfc   :  { %v1592_v42 = vsel %vm1590_vm5, %v1589_v40, %v1583_v41 }
 0xcfd   :  { %1594 = vst.msk [vmem:[#allocation4 + $0x8] sm:$0xff] %vm55_vm0, %v1592_v42  ;;  %v1581_v44 = vpop.permute.xlu0 %1580 }
 0xcfe   :  { %v1591_v45 = vsel %vm1590_vm5, %v1588_v43, %v1581_v44 }
 0xcff   :  { %1593 = vst.msk [vmem:[#allocation4] sm:$0xff] %vm55_vm0, %v1591_v45  ;;  %2011 = vmatprep.mubr.msk.f32.mxu0 %vm55_vm0, %v1591_v45 }
 0xd00   :  { %2012 = vmatmul.mubr.msk.f32.vlgmr.msra.gmra.mxu0 %vm55_vm0, %v1592_v42 }
 0xd01   :  { %2076 = shalt.err (!%p2073_p4)
}
 0xd02   :  { %s2118_s3 = smov 128   ;;  %s2119_s2 = smov [#allocation2]  }
 0xd03   :  { %1717 = dma.vmem_to_hbm [thread:$0]  %s1712_s24, 256, %s2599_s15, [#allocation5], %s2118_s3, %s2118_s3, %s2109_s27  }
 0xd04   :  { %s1699_s8 = sshll.u32 %s2119_s2, 4  ;;  %s1700_s8 = int_to_ptr.vmem [resolvable:$true] %s1699_s8 }
 0xd05   :  { %s2085_s26 = scalar_lea.vmem %s1700_s8, 256  ;;  %p2090_p6 = scmp.lt.s32.totalorder %s1700_s8, %s1700_s8 }
 0xd06   :  { %p2086_p5 = scmp.ne.s32.totalorder %s1700_s8, %s2085_s26  ;;  %p2091_p7 = scmp.lt.s32.totalorder %s2085_s26, %s2085_s26 }
 0xd08   :  { %p2092_p8 = por %p2091_p7, %p2090_p6 }
 0xd0a   :  { %p2093_p9 = pnand %p2092_p8, %p2086_p5 }
 0xdc0   :  { %v2013_v62 = vpop.f32.mrf.mxu0 }
 0xdc1   :  { %1693 = vst.msk [vmem:[#allocation2 + $0x8] sm:$0xff] %vm55_vm0, %v2013_v62 }
 0xdc2   :  { %v1683_v63 = vpop.f32.mrf.mxu0 }
 0xdc3   :  { %1692 = vst.msk [vmem:[#allocation2] sm:$0xff] %vm55_vm0, %v1683_v63 }
 0xdc4   :  { %2096 = shalt.err (!%p2093_p9)
}
 0xdc5   :  { %1705 = dma.vmem_to_hbm [thread:$0]  %s1700_s8, 256, %s2598_s14, [#allocation3], %s2118_s3, %s2118_s3, %s2109_s27  }
 0xdc6   :  { %2105 = dma.done.wait [#allocation3], 256  }
 0xdc7   :  { %2106 = vsyncadd [#allocation3], 4294967040 }
 0xdc8   :  { %2107 = dma.done.wait [#allocation5], 256  }
 0xdc9   :  { %2108 = vsyncadd [#allocation5], 4294967040 }
 0xdca   :  { %1724 = vsyncpa [#allocation3], 1 }
 0xdcb   :  { %1725 = vsyncpa [#allocation5], 1 }

</bundles_post_ra>
